<compile_context>
chip_gen: v5e
topology: v5e:2x2
jax: 0.10.0
libtpu: 0.0.40
codegen_flags: <defaults>
</compile_context>

<pallas_src>
import functools

import jax
import jax.numpy as jnp
from jax.experimental import pallas as pl
from jax.experimental.pallas import tpu as pltpu


def _round_up(x, m):
    return ((x + m - 1) // m) * m


try:  # VMEM capacity differs per generation (v5e/v6e: 128 MiB, v7x: 64 MiB per TC).
    _VMEM_CAP = int(getattr(pltpu.get_tpu_info(), "vmem_capacity_bytes",
                            64 * 1024 * 1024))
except Exception:  # pragma: no cover - CPU tracing / old runtime
    _VMEM_CAP = 64 * 1024 * 1024
# ~48 MiB on v7x, 96 MiB on v5e/v6e.
_VMEM_BUDGET = min((_VMEM_CAP * 3) // 4, 96 * 1024 * 1024)


def _pick_tile(padded, cap, granule=128, min_tiles=1):
    """Largest granule-multiple tile that divides `padded`, is <= cap and (if possible)
    leaves at least `min_tiles` tiles (so both v7x TensorCores get N work)."""
    q = padded // granule
    candidates = [granule * d for d in range(1, q + 1)
                  if q % d == 0 and granule * d <= cap]
    if not candidates:
        candidates = [granule]
    preferred = [t for t in candidates if padded // t >= min_tiles]
    return max(preferred) if preferred else max(candidates)


def _make_linear_kernel(tk, x_resident):
    """Kernel over grid (M, N, K). x: (tm, k_pad) [resident] or (tm, tk);
    w: (tk, tn) in pre-transposed (K, N) layout; b: (1, tn) f32; o: (tm, tn);
    acc: f32 (tm, tn) scratch resident across the K axis."""

    def kernel(x_ref, w_ref, b_ref, o_ref, acc_ref):
        k = pl.program_id(2)

        @pl.when(k == 0)
        def _init():
            acc_ref[...] = jnp.zeros_like(acc_ref)

        if x_resident:
            start = pl.multiple_of(k * tk, tk)
            x_tile = x_ref[:, pl.ds(start, tk)]
        else:
            x_tile = x_ref[...]

        # Clean (tm, tk) x (tk, tn) MXU matmul, f32 accumulation.
        acc_ref[...] += jnp.dot(x_tile, w_ref[...],
                                preferred_element_type=jnp.float32)

        @pl.when(k == pl.num_programs(2) - 1)
        def _finalize():
            o_ref[...] = (acc_ref[...] + b_ref[...]).astype(o_ref.dtype)

    return kernel


class PallasLinearOnSecondDim:
    """Holds the one-time prepared (transposed, padded, bf16) weight and runs the kernel."""

    def __init__(self, weight, bias, *, compute_dtype=jnp.bfloat16, tk=None, tn=None):
        out_dim, in_dim = weight.shape
        self.out_dim, self.in_dim = out_dim, in_dim
        self.compute_dtype = jnp.dtype(compute_dtype)

        self.k_pad = _round_up(in_dim, 128)
        self.n_pad = _round_up(out_dim, 128)
        self.tk = tk if tk is not None else _pick_tile(self.k_pad, 2048)
        # Prefer >=2 N tiles: with tiny batch the M grid is 1, so N is the only axis
        # that shards across v7x's two TensorCores.
        self.tn = tn if tn is not None else _pick_tile(self.n_pad, 2048, min_tiles=2)

        # --- one-time weight relayout (amortized across all forward calls) ---
        w_kn = jnp.asarray(weight).T                     # (in_dim, out_dim) == (K, N)
        if (self.k_pad, self.n_pad) != (in_dim, out_dim):
            w_kn = jnp.pad(w_kn, ((0, self.k_pad - in_dim), (0, self.n_pad - out_dim)))
        self.w_kn = w_kn.astype(self.compute_dtype)

        b = jnp.asarray(bias, jnp.float32).reshape(1, out_dim)
        if self.n_pad != out_dim:
            b = jnp.pad(b, ((0, 0), (0, self.n_pad - out_dim)))
        self.b = b

    def __call__(self, x):
        batch, seq, embed = x.shape
        assert seq * embed == self.in_dim, "input_dim must equal seq_len * embed_dim"
        assert self.out_dim % seq == 0, "output_dim must be divisible by seq_len"

        k_pad, n_pad, tk, tn = self.k_pad, self.n_pad, self.tk, self.tn
        tm = min(_round_up(batch, 8), 256)           # 256 feeds the full v6e/v7x MXU
        m_pad = _round_up(batch, tm)

        x_flat = x.reshape(batch, self.in_dim).astype(self.compute_dtype)
        if (m_pad, k_pad) != (batch, self.in_dim):
            x_flat = jnp.pad(x_flat, ((0, m_pad - batch), (0, k_pad - self.in_dim)))

        cbytes = self.compute_dtype.itemsize
        obytes = jnp.dtype(x.dtype).itemsize

        # Keep the full-K x row block VMEM-resident per M tile (loaded once, sliced per
        # K step) unless it would eat too much of the budget.
        x_resident = tm * k_pad * cbytes <= _VMEM_BUDGET // 4
        if x_resident:
            x_spec = pl.BlockSpec((tm, k_pad), lambda i, j, k: (i, 0))
        else:
            x_spec = pl.BlockSpec((tm, tk), lambda i, j, k: (i, k))

        grid = (m_pad // tm, n_pad // tn, k_pad // tk)

        vmem_estimate = int(
            2 * tk * tn * cbytes                                  # W double-buffer
            + 2 * tm * (k_pad if x_resident else tk) * cbytes     # x buffers
            + 2 * tn * 4                                          # bias
            + tm * tn * 4                                         # f32 accumulator
            + 2 * tm * tn * obytes                                # output double-buffer
        )
        vmem_limit = min(_VMEM_BUDGET,
                         max(32 * 1024 * 1024, int(vmem_estimate * 1.25)))

        cost = pl.CostEstimate(
            flops=2 * m_pad * k_pad * n_pad,
            bytes_accessed=int(m_pad * k_pad * cbytes                    # x (once per M tile)
                               + (m_pad // tm) * k_pad * n_pad * cbytes  # W streamed per M tile
                               + n_pad * 4
                               + m_pad * n_pad * obytes),
            transcendentals=0,
        )

        kernel = _make_linear_kernel(tk, x_resident)
        # TODO(synk): if a profile shows exposed DMA at step boundaries, set
        # pipeline_mode=pl.Buffered(3) on the weight BlockSpec below.
        y_flat = pl.pallas_call(
            kernel,
            out_shape=jax.ShapeDtypeStruct((m_pad, n_pad), x.dtype),
            grid_spec=pltpu.PrefetchScalarGridSpec(
                num_scalar_prefetch=0,
                grid=grid,
                in_specs=[
                    x_spec,                                            # x
                    pl.BlockSpec((tk, tn), lambda i, j, k: (k, j)),    # W in (K, N) layout
                    pl.BlockSpec((1, tn), lambda i, j, k: (0, j)),     # bias
                ],
                out_specs=pl.BlockSpec((tm, tn), lambda i, j, k: (i, j)),
                scratch_shapes=[pltpu.VMEM((tm, tn), jnp.float32)],
            ),
            compiler_params=pltpu.CompilerParams(
                dimension_semantics=("parallel", "parallel", "arbitrary"),
                vmem_limit_bytes=vmem_limit,
            ),
            cost_estimate=cost,
        )(x_flat, self.w_kn, self.b)

        y_flat = y_flat[:batch, :self.out_dim]
        return y_flat.reshape(batch, seq, self.out_dim // seq)


def linear_on_second_dim(x, weight, bias, **kwargs):
    """One-off functional form (prefer PallasLinearOnSecondDim for repeated calls so the
    weight relayout/padding/cast happens once)."""
    return PallasLinearOnSecondDim(weight, bias, **kwargs)(x)


if __name__ == "__main__":
    key = jax.random.PRNGKey(0)
    kx, kw, kb = jax.random.split(key, 3)

    # Small shapes consistent with the module's forward.
    batch, seq, embed = 2, 8, 32
    input_dim = seq * embed          # 256
    output_dim = seq * 16            # 128 (divisible by seq)

    x = jax.random.normal(kx, (batch, seq, embed), dtype=jnp.float32)
    bound = 1.0 / (input_dim ** 0.5)  # nn.Linear-style init
    weight = jax.random.uniform(kw, (output_dim, input_dim), jnp.float32, -bound, bound)
    bias = jax.random.uniform(kb, (output_dim,), jnp.float32, -bound, bound)

    layer = PallasLinearOnSecondDim(weight, bias)   # one-time weight prep
    y = layer(x)
    jax.block_until_ready(y)

    # Reference (same math as the PyTorch module); bf16 streaming -> loose tolerance.
    y_ref = (x.reshape(batch, -1) @ weight.T + bias).reshape(batch, seq, -1)
    assert y.shape == (batch, seq, output_dim // seq)
    assert jnp.allclose(y, y_ref, atol=2e-2, rtol=2e-2), "mismatch vs reference"

    print("KERNEL_OK")
</pallas_src>

<mosaic_0001>
module attributes {stable_mosaic.version = 11 : i64} {
  func.func @kernel(%arg0: i32, %arg1: i32, %arg2: i32, %arg3: memref<8x256xbf16, #tpu.memory_space<vmem>>, %arg4: memref<256x128xbf16, #tpu.memory_space<vmem>>, %arg5: memref<1x128xf32, #tpu.memory_space<vmem>>, %arg6: memref<8x128xf32, #tpu.memory_space<vmem>>, %arg7: memref<8x128xf32, #tpu.memory_space<vmem>>) attributes {dimension_semantics = [#tpu.dimension_semantics<parallel>, #tpu.dimension_semantics<parallel>, #tpu.dimension_semantics<arbitrary>], iteration_bounds = array<i64: 1, 1, 1>, scalar_prefetch = 0 : i64, scratch_operands = 1 : i64, tpu.core_type = #tpu.core_type<tc>, window_params = [{transform_indices = @transform_0, window_bounds = array<i64: 8, 256>}, {transform_indices = @transform_1, window_bounds = array<i64: 256, 128>}, {transform_indices = @transform_2, window_bounds = array<i64: 1, 128>}, {transform_indices = @transform_3, window_bounds = array<i64: 8, 128>}]} {
    %c0_i32 = arith.constant 0 : i32
    %0 = arith.cmpi eq, %arg2, %c0_i32 : i32
    %1 = arith.extui %0 : i1 to i32
    %c0_i32_0 = arith.constant 0 : i32
    %2 = arith.cmpi ne, %1, %c0_i32_0 : i32
    scf.if %2 {
      %cst_9 = arith.constant 0.000000e+00 : f32
      %15 = vector.broadcast %cst_9 : f32 to vector<8x128xf32>
      %c0_10 = arith.constant 0 : index
      %c0_11 = arith.constant 0 : index
      %16 = vector.load %arg7[%c0_10, %c0_11] : memref<8x128xf32, #tpu.memory_space<vmem>>, vector<8x128xf32>
      tpu.vector_store %arg7[%c0_10, %c0_11], %15 {strides = array<i32>} : memref<8x128xf32, #tpu.memory_space<vmem>>, vector<8x128xf32>,
    } else {
    }
    %c256_i32 = arith.constant 256 : i32
    %3 = arith.muli %arg2, %c256_i32 : i32
    %4 = tpu.assume_multiple %3, 256 : i32
    %c0 = arith.constant 0 : index
    %5 = arith.index_cast %4 : i32 to index
    %6 = vector.load %arg3[%c0, %5] : memref<8x256xbf16, #tpu.memory_space<vmem>>, vector<8x256xbf16>
    %c0_1 = arith.constant 0 : index
    %c0_2 = arith.constant 0 : index
    %7 = vector.load %arg7[%c0_1, %c0_2] : memref<8x128xf32, #tpu.memory_space<vmem>>, vector<8x128xf32>
    %c0_3 = arith.constant 0 : index
    %c0_4 = arith.constant 0 : index
    %8 = vector.load %arg4[%c0_3, %c0_4] : memref<256x128xbf16, #tpu.memory_space<vmem>>, vector<256x128xbf16>
    %cst = arith.constant dense<0.000000e+00> : vector<8x128xf32>
    %9 = tpu.matmul %6, %8, %cst {dimension_numbers = #tpu.dot_dimension_numbers<[1], [0], [0], [1], [0, 0, 1, 1], [], []>} : vector<8x256xbf16>, vector<256x128xbf16>, vector<8x128xf32> -> vector<8x128xf32>
    %10 = arith.addf %7, %9 : vector<8x128xf32>
    %c0_5 = arith.constant 0 : index
    %c0_6 = arith.constant 0 : index
    %11 = vector.load %arg7[%c0_5, %c0_6] : memref<8x128xf32, #tpu.memory_space<vmem>>, vector<8x128xf32>
    tpu.vector_store %arg7[%c0_5, %c0_6], %10 {strides = array<i32>} : memref<8x128xf32, #tpu.memory_space<vmem>>, vector<8x128xf32>,
    %c0_i32_7 = arith.constant 0 : i32
    %12 = arith.cmpi eq, %arg2, %c0_i32_7 : i32
    %13 = arith.extui %12 : i1 to i32
    %c0_i32_8 = arith.constant 0 : i32
    %14 = arith.cmpi ne, %13, %c0_i32_8 : i32
    scf.if %14 {
      %c0_9 = arith.constant 0 : index
      %c0_10 = arith.constant 0 : index
      %15 = vector.load %arg7[%c0_9, %c0_10] : memref<8x128xf32, #tpu.memory_space<vmem>>, vector<8x128xf32>
      %c0_11 = arith.constant 0 : index
      %c0_12 = arith.constant 0 : index
      %16 = vector.load %arg5[%c0_11, %c0_12] : memref<1x128xf32, #tpu.memory_space<vmem>>, vector<1x128xf32>
      %17 = vector.broadcast %16 : vector<1x128xf32> to vector<8x128xf32>
      %18 = arith.addf %15, %17 : vector<8x128xf32>
      %c0_13 = arith.constant 0 : index
      %c0_14 = arith.constant 0 : index
      %19 = vector.load %arg6[%c0_13, %c0_14] : memref<8x128xf32, #tpu.memory_space<vmem>>, vector<8x128xf32>
      tpu.vector_store %arg6[%c0_13, %c0_14], %18 {strides = array<i32>} : memref<8x128xf32, #tpu.memory_space<vmem>>, vector<8x128xf32>,
    } else {
    }
    return
  }
  func.func @transform_0(%arg0: i32, %arg1: i32, %arg2: i32) -> (i32, i32) {
    %c0_i32 = arith.constant 0 : i32
    %c0_i32_0 = arith.constant 0 : i32
    return %arg0, %c0_i32 : i32, i32
  }
  func.func @transform_1(%arg0: i32, %arg1: i32, %arg2: i32) -> (i32, i32) {
    %c0_i32 = arith.constant 0 : i32
    return %arg2, %arg1 : i32, i32
  }
  func.func @transform_2(%arg0: i32, %arg1: i32, %arg2: i32) -> (i32, i32) {
    %c0_i32 = arith.constant 0 : i32
    %c0_i32_0 = arith.constant 0 : i32
    return %c0_i32, %arg1 : i32, i32
  }
  func.func @transform_3(%arg0: i32, %arg1: i32, %arg2: i32) -> (i32, i32) {
    %c0_i32 = arith.constant 0 : i32
    return %arg0, %arg1 : i32, i32
  }
}

</mosaic_0001>

<bundles_post_ra>
// kernel: tpu_custom_call.1
= control target key start
LH: loop header
LB: loop body
LE: loop exit
PB: predicated region body
PF: predicated region fallthrough
CT: control target
= control target key end

     0   :  { %8 = vsyncpa [#allocation4], 0  ;;  %s451_s0 = inlined_call_operand.hbm [shape: bf16[8,256], index: 0, kind: input, shape index: {}]   ;;  %s452_s1 = inlined_call_operand.hbm [shape: bf16[256,128], index: 1, kind: input, shape index: {}]   ;;  %s453_s2 = inlined_call_operand.vmem [shape: f32[1,128], index: 2, kind: input, shape index: {}]   ;;  %s454_s3 = inlined_call_operand.hbm [shape: f32[8,128], index: 3, kind: output, shape index: {}]  }
   0x1   :  { %9 = vsyncpa [#allocation7], 0 }
   0x2   :  { %10 = vsyncpa [#allocation5], 0  ;;  %s16_s14 = sshll.u32 %s451_s0, 4  ;;  %s414_s15 = smov [#allocation3]   ;;  %s17_s14 = int_to_ptr.hbm [resolvable:$true] %s16_s14 }
   0x3   :  { %s18_s16 = sshll.u32 %s414_s15, 4  ;;  %s26_s19 = sshll.u32 %s452_s1, 4  ;;  %s19_s16 = int_to_ptr.vmem [resolvable:$true] %s18_s16  ;;  %s27_s19 = int_to_ptr.hbm [resolvable:$true] %s26_s19 }
   0x4   :  { %21 = dma.hbm_to_vmem [thread:$0]  %s17_s14, 128, %s19_s16, [#allocation4]  }
   0x5   :  { %s415_s20 = smov [#allocation6]   ;;  %s416_s22 = smov 64  }
   0x6   :  { %s28_s21 = sshll.u32 %s415_s20, 4  ;;  %s417_s23 = smov 4   ;;  %s29_s21 = int_to_ptr.vmem [resolvable:$true] %s28_s21 }
   0x7   :  { %34 = dma.hbm_to_vmem [thread:$0]  %s27_s19, 2048, %s29_s21, [#allocation7], %s416_s22, %s416_s22, %s417_s23  }
   0x8   :  { %408 = dma.done.wait [#allocation4], 128  }
   0x9   :  { %409 = vsyncadd [#allocation4], 4294967168 }
   0xa   :  { %410 = dma.done.wait [#allocation7], 2048  }
   0xb   :  { %411 = vsyncadd [#allocation7], 4294965248  ;;  %v321_v0 = vld [vmem:[#allocation6 + $0x38] sm:$0xff]  ;;  %v320_v2 = vld [vmem:[#allocation6 + $0x30] sm:$0xff]  ;;  %s418_s24 = smov [#allocation8]   ;;  %s237_s28 = sshll.u32 %s454_s3, 4  ;;  %s238_s28 = int_to_ptr.hbm [resolvable:$true] %s237_s28 }
   0xc   :  { %v329_v1 = vld [vmem:[#allocation6 + $0x78] sm:$0xff]  ;;  %192 = vmatpush.bf16.msra.mxu0 %v321_v0  ;;  %v328_v3 = vld [vmem:[#allocation6 + $0x70] sm:$0xff]  ;;  %v319_v4 = vld [vmem:[#allocation6 + $0x28] sm:$0xff]  ;;  %s235_s25 = sshll.u32 %s418_s24, 4  ;;  %s236_s25 = int_to_ptr.vmem [resolvable:$true] %s235_s25 }
   0xd   :  { %205 = vmatpush.bf16.msra.mxu1 %v329_v1  ;;  %v327_v5 = vld [vmem:[#allocation6 + $0x68] sm:$0xff]  ;;  %v318_v6 = vld [vmem:[#allocation6 + $0x20] sm:$0xff]  ;;  %v317_v8 = vld [vmem:[#allocation6 + $0x18] sm:$0xff] }
   0xe   :  { %v326_v7 = vld [vmem:[#allocation6 + $0x60] sm:$0xff]  ;;  %v325_v9 = vld [vmem:[#allocation6 + $0x58] sm:$0xff]  ;;  %v316_v10 = vld [vmem:[#allocation6 + $0x10] sm:$0xff] }
   0xf   :  { %v324_v11 = vld [vmem:[#allocation6 + $0x50] sm:$0xff]  ;;  %v315_v12 = vld [vmem:[#allocation6 + $0x8] sm:$0xff]  ;;  %v55_v14 = vld [vmem:[#allocation3] sm:$0xff] }
  0x10   :  { %193 = vmatpush.bf16.msra.mxu0 %v320_v2  ;;  %v323_v13 = vld [vmem:[#allocation6 + $0x48] sm:$0xff]  ;;  %v90_v15 = vunpack.c.l.b16 %v55_v14  ;;  %v91_v16 = vunpack.c.h.b16 %v55_v14  ;;  %v314_v17 = vld [vmem:[#allocation6] sm:$0xff]  ;;  %v335_v21 = vld [vmem:[%s453_s2] ss:$0 sm:$0xff] }
  0x11   :  { %206 = vmatpush.bf16.msra.mxu1 %v328_v3  ;;  %v322_v18 = vld [vmem:[#allocation6 + $0x40] sm:$0xff] }
  0x12   :  { %v92_v19 = vpack.c.b16 %v90_v15, %v90_v15  ;;  %v93_v20 = vpack.c.b16 %v91_v16, %v91_v16 }
  0x14   :  { %194 = vmatpush.bf16.msra.mxu0 %v319_v4 }
  0x15   :  { %207 = vmatpush.bf16.msra.mxu1 %v327_v5 }
  0x18   :  { %195 = vmatpush.bf16.msra.mxu0 %v318_v6 }
  0x19   :  { %208 = vmatpush.bf16.msra.mxu1 %v326_v7 }
  0x1c   :  { %196 = vmatpush.bf16.msra.mxu0 %v317_v8 }
  0x1d   :  { %209 = vmatpush.bf16.msra.mxu1 %v325_v9 }
  0x20   :  { %197 = vmatpush.bf16.msra.mxu0 %v316_v10 }
  0x21   :  { %210 = vmatpush.bf16.msra.mxu1 %v324_v11 }
  0x24   :  { %198 = vmatpush.bf16.msra.mxu0 %v315_v12 }
  0x25   :  { %211 = vmatpush.bf16.msra.mxu1 %v323_v13 }
  0x28   :  { %199 = vmatpush.bf16.msra.mxu0 %v314_v17 }
  0x29   :  { %212 = vmatpush.bf16.msra.mxu1 %v322_v18 }
  0x2b   :  { %200 = vmatmul.bf16.vlgmr.msra.gmra.mxu0 %v92_v19 }
  0x2c   :  { %213 = vmatmul.bf16.vlgmr.msra.gmra.mxu1 %v93_v20 }
  0xa8   :  { %v201_v22 = vpop.f32.mrf.mxu0 }
  0xa9   :  { %v214_v23 = vpop.f32.mrf.mxu1 }
  0xaa   :  { %v215_v24 = vadd.f32 %v214_v23, %v201_v22 }
  0xac   :  { %v228_v25 = vadd.f32 %v335_v21, %v215_v24 }
  0xae   :  { %229 = vst [vmem:[#allocation8] sm:$0xff] %v228_v25 }
  0xaf   :  { %240 = dma.vmem_to_hbm [thread:$0]  %s236_s25, 128, %s238_s28, [#allocation5]  }
  0xb0   :  { %v203_v26 = vpop.f32.mrf.mxu0 }
  0xb1   :  { %v216_v27 = vpop.f32.mrf.mxu1 }
  0xb2   :  { %412 = dma.done.wait [#allocation5], 128  }
  0xb3   :  { %413 = vsyncadd [#allocation5], 4294967168 }
  0xb4   :  { %245 = vsyncpa [#allocation4], 1 }
  0xb5   :  { %246 = vsyncpa [#allocation7], 1 }
  0xb6   :  { %247 = vsyncpa [#allocation5], 1 }

</bundles_post_ra>
